<compile_context>
chip_gen: v5e
topology: v5e:2x2
jax: 0.10.0
libtpu: 0.0.40
codegen_flags: <defaults>
</compile_context>

<pallas_src>
import jax
import jax.numpy as jnp
from jax.experimental import pallas as pl
from jax.experimental.pallas import tpu as pltpu


def _linear_kernel(x_ref, w_ref, b_ref, o_ref):
    # x_ref: [TM, n_hid]        (one batch tile, possibly bf16)
    # w_ref: [n_hid, n_class]   (pre-transposed, grid-constant)
    # b_ref: [1, n_class]       (f32 bias, grid-constant)
    # o_ref: [TM, n_class]
    acc = jnp.dot(x_ref[...], w_ref[...], preferred_element_type=jnp.float32)
    o_ref[...] = (acc + b_ref[...]).astype(o_ref.dtype)


def _pick_tile(N, tile_m):
    """Sublane-aligned batch tile; cap so large problems get >= 4 grid steps."""
    tm_pref = max(8, (tile_m // 8) * 8)
    if N <= tm_pref:
        return N  # full-dim block is always a legal block shape
    quarter = max(8, (((N + 3) // 4) + 7) // 8 * 8)  # ~N/4, sublane aligned
    return min(tm_pref, quarter)


def hgnn_classifier_forward(x, weight, bias, *, tile_m=8192,
                            compute_dtype="auto", out_dtype=None):
    """Forward of HGNN_classifier: y = x @ weight.T + bias.

    x:      [N, n_hid]
    weight: [n_class, n_hid]  (PyTorch nn.Linear layout)
    bias:   [n_class]
    compute_dtype: "auto" (default) streams x/weight as bf16 when x is f32;
        None keeps the input dtype; or pass an explicit dtype.
        Accumulation is always f32 on the MXU.
    out_dtype: output dtype (defaults to x's original dtype).
    """
    N, n_hid = x.shape
    n_class = weight.shape[0]
    if out_dtype is None:
        out_dtype = x.dtype

    # --- one-time parameter layout (constant-folds under jit) ---------------
    w_t = jnp.transpose(weight)                      # [n_hid, n_class]
    b_2d = bias.astype(jnp.float32).reshape(1, n_class)

    if compute_dtype == "auto":
        compute_dtype = jnp.bfloat16 if x.dtype == jnp.float32 else None
    if compute_dtype is not None:
        x = x.astype(compute_dtype)
        w_t = w_t.astype(compute_dtype)

    # --- batch tiling --------------------------------------------------------
    tm = _pick_tile(N, tile_m)
    grid_m = pl.cdiv(N, tm)

    # --- need-based VMEM budget with headroom (never the full physical cap) --
    x_b = jnp.dtype(x.dtype).itemsize
    w_b = jnp.dtype(w_t.dtype).itemsize
    o_b = jnp.dtype(out_dtype).itemsize
    needed = (2 * tm * n_hid * x_b            # x tile, double-buffered
              + 2 * tm * n_class * o_b        # out tile, double-buffered
              + 2 * n_hid * n_class * w_b     # weight (grid-constant)
              + 2 * n_class * 4)              # bias
    vmem_limit = int(min(48 * 1024 * 1024,
                         max(2 * needed, 16 * 1024 * 1024)))

    return pl.pallas_call(
        _linear_kernel,
        out_shape=jax.ShapeDtypeStruct((N, n_class), out_dtype),
        grid_spec=pltpu.PrefetchScalarGridSpec(
            num_scalar_prefetch=0,
            grid=(grid_m,),
            in_specs=[
                pl.BlockSpec((tm, n_hid), lambda i: (i, 0)),       # x tile
                pl.BlockSpec((n_hid, n_class), lambda i: (0, 0)),  # weight
                pl.BlockSpec((1, n_class), lambda i: (0, 0)),      # bias
            ],
            out_specs=pl.BlockSpec((tm, n_class), lambda i: (i, 0)),
        ),
        compiler_params=pltpu.CompilerParams(
            dimension_semantics=("parallel",),   # shards across TCs on v7x
            vmem_limit_bytes=vmem_limit,
        ),
    )(x, w_t, b_2d)


if __name__ == "__main__":
    key = jax.random.PRNGKey(0)
    kx, kw, kb, kx2, kx3 = jax.random.split(key, 5)

    # Shapes consistent with the module: n_hid=32 features, n_class=8 classes.
    n_hid, n_class = 32, 8
    bound = 1.0 / (n_hid ** 0.5)
    weight = jax.random.uniform(kw, (n_class, n_hid), minval=-bound,
                                maxval=bound, dtype=jnp.float32)
    bias = jax.random.uniform(kb, (n_class,), minval=-bound, maxval=bound,
                              dtype=jnp.float32)

    # 1) Small single-tile case (N=16), exact f32 streaming.
    N1 = 16
    x1 = jax.random.normal(kx, (N1, n_hid), dtype=jnp.float32)
    out1 = jax.block_until_ready(
        hgnn_classifier_forward(x1, weight, bias, compute_dtype=None))
    ref1 = x1 @ weight.T + bias
    assert out1.shape == (N1, n_class)
    assert jnp.allclose(out1, ref1, atol=1e-5, rtol=1e-5)

    # 2) Multi-tile case (N=256, tile_m=64 -> 4 pipelined grid steps), f32.
    N2 = 256
    x2 = jax.random.normal(kx2, (N2, n_hid), dtype=jnp.float32)
    out2 = jax.block_until_ready(
        hgnn_classifier_forward(x2, weight, bias, tile_m=64,
                                compute_dtype=None))
    ref2 = x2 @ weight.T + bias
    assert out2.shape == (N2, n_class)
    assert jnp.allclose(out2, ref2, atol=1e-5, rtol=1e-5)

    # 3) Ragged last block (N=200, tile_m=64 -> blocks 64,64,64,8), f32.
    N3 = 200
    x3 = jax.random.normal(kx3, (N3, n_hid), dtype=jnp.float32)
    out3 = jax.block_until_ready(
        hgnn_classifier_forward(x3, weight, bias, tile_m=64,
                                compute_dtype=None))
    ref3 = x3 @ weight.T + bias
    assert out3.shape == (N3, n_class)
    assert jnp.allclose(out3, ref3, atol=1e-5, rtol=1e-5)

    # 4) Default path: bf16 streaming of x/weight, f32 accumulate, f32 output.
    out4 = jax.block_until_ready(hgnn_classifier_forward(x2, weight, bias))
    assert out4.shape == (N2, n_class)
    assert out4.dtype == x2.dtype
    assert jnp.allclose(out4, ref2, atol=5e-2, rtol=5e-2)

    print("KERNEL_OK")
</pallas_src>

<mosaic_0001>
module attributes {stable_mosaic.version = 11 : i64} {
  func.func @_linear_kernel(%arg0: i32, %arg1: memref<16x32xf32, #tpu.memory_space<vmem>>, %arg2: memref<32x8xf32, #tpu.memory_space<vmem>>, %arg3: memref<1x8xf32, #tpu.memory_space<vmem>>, %arg4: memref<16x8xf32, #tpu.memory_space<vmem>>) attributes {dimension_semantics = [#tpu.dimension_semantics<parallel>], iteration_bounds = array<i64: 1>, scalar_prefetch = 0 : i64, scratch_operands = 0 : i64, tpu.core_type = #tpu.core_type<tc>, window_params = [{transform_indices = @transform_0, window_bounds = array<i64: 16, 32>}, {pipeline_mode = #tpu.pipeline_mode<synchronous>, transform_indices = @transform_1, window_bounds = array<i64: 32, 8>}, {pipeline_mode = #tpu.pipeline_mode<synchronous>, transform_indices = @transform_2, window_bounds = array<i64: 1, 8>}, {transform_indices = @transform_3, window_bounds = array<i64: 16, 8>}]} {
    %c0 = arith.constant 0 : index
    %c0_0 = arith.constant 0 : index
    %0 = vector.load %arg1[%c0, %c0_0] : memref<16x32xf32, #tpu.memory_space<vmem>>, vector<16x32xf32>
    %c0_1 = arith.constant 0 : index
    %c0_2 = arith.constant 0 : index
    %1 = vector.load %arg2[%c0_1, %c0_2] : memref<32x8xf32, #tpu.memory_space<vmem>>, vector<32x8xf32>
    %cst = arith.constant dense<0.000000e+00> : vector<16x8xf32>
    %2 = tpu.matmul %0, %1, %cst {dimension_numbers = #tpu.dot_dimension_numbers<[1], [0], [0], [1], [0, 0, 1, 1], [], []>} : vector<16x32xf32>, vector<32x8xf32>, vector<16x8xf32> -> vector<16x8xf32>
    %c0_3 = arith.constant 0 : index
    %c0_4 = arith.constant 0 : index
    %3 = vector.load %arg3[%c0_3, %c0_4] : memref<1x8xf32, #tpu.memory_space<vmem>>, vector<1x8xf32>
    %4 = vector.broadcast %3 : vector<1x8xf32> to vector<16x8xf32>
    %5 = arith.addf %2, %4 : vector<16x8xf32>
    %c0_5 = arith.constant 0 : index
    %c0_6 = arith.constant 0 : index
    %6 = vector.load %arg4[%c0_5, %c0_6] : memref<16x8xf32, #tpu.memory_space<vmem>>, vector<16x8xf32>
    tpu.vector_store %arg4[%c0_5, %c0_6], %5 {strides = array<i32>} : memref<16x8xf32, #tpu.memory_space<vmem>>, vector<16x8xf32>,
    return
  }
  func.func @transform_0(%arg0: i32) -> (i32, i32) {
    %c0_i32 = arith.constant 0 : i32
    %c0_i32_0 = arith.constant 0 : i32
    return %arg0, %c0_i32 : i32, i32
  }
  func.func @transform_1(%arg0: i32) -> (i32, i32) {
    %c0_i32 = arith.constant 0 : i32
    %c0_i32_0 = arith.constant 0 : i32
    %c0_i32_1 = arith.constant 0 : i32
    return %c0_i32, %c0_i32_0 : i32, i32
  }
  func.func @transform_2(%arg0: i32) -> (i32, i32) {
    %c0_i32 = arith.constant 0 : i32
    %c0_i32_0 = arith.constant 0 : i32
    %c0_i32_1 = arith.constant 0 : i32
    return %c0_i32, %c0_i32_0 : i32, i32
  }
  func.func @transform_3(%arg0: i32) -> (i32, i32) {
    %c0_i32 = arith.constant 0 : i32
    %c0_i32_0 = arith.constant 0 : i32
    return %arg0, %c0_i32 : i32, i32
  }
}

</mosaic_0001>

<bundles_post_ra>
// kernel: tpu_custom_call.1
= control target key start
LH: loop header
LB: loop body
LE: loop exit
PB: predicated region body
PF: predicated region fallthrough
CT: control target
= control target key end

     0   :  { %vm24_vm0 = vcmask 261120   ;;  %vm54_vm1 = vcmask 64512   ;;  %s115_s1 = inlined_call_operand.vmem [shape: f32[32,8], index: 1, kind: input, shape index: {}]   ;;  %s116_s2 = inlined_call_operand.vmem [shape: f32[1,8], index: 2, kind: input, shape index: {}]   ;;  %s117_s0 = inlined_call_operand.vmem [shape: f32[16,32], index: 0, kind: input, shape index: {}]   ;;  %s118_s3 = inlined_call_operand.vmem [shape: f32[16,8], index: 3, kind: output, shape index: {}]  }
   0x1   :  { %v19_v0 = vld [vmem:[%s115_s1 + $0x18] sm:$0xff]  ;;  %v18_v1 = vld [vmem:[%s115_s1 + $0x10] sm:$0xff]  ;;  %v17_v2 = vld [vmem:[%s115_s1 + $0x8] sm:$0xff] }
   0x2   :  { %43 = vmatpush.msra.mxu0 %v19_v0  ;;  %63 = vmatpush.msra.mxu1 %v19_v0  ;;  %v16_v3 = vld [vmem:[%s115_s1] sm:$0xff]  ;;  %v15_v5 = vld [vmem:[%s117_s0 + $0x8] sm:$0xff] }
   0x3   :  { %v14_v4 = vld [vmem:[%s117_s0] sm:$0xff] }
   0x4   :  { %44 = vmatpush.msra.mxu0 %v18_v1  ;;  %64 = vmatpush.msra.mxu1 %v18_v1  ;;  %v67_v6 = vld [vmem:[%s116_s2] ss:$0 sm:$0xff] }
   0x6   :  { %45 = vmatpush.msra.mxu0 %v17_v2  ;;  %65 = vmatpush.msra.mxu1 %v17_v2 }
   0x8   :  { %46 = vmatpush.msra.mxu0 %v16_v3  ;;  %66 = vmatpush.msra.mxu1 %v16_v3 }
   0x9   :  { %61 = vmatmul.msk.f32.vlgmr.msra.gmra.mxu0 %vm24_vm0, %v14_v4  ;;  %62 = vmatmul.msk.f32.vlgmr.msra.gmra.mxu1 %vm24_vm0, %v15_v5 }
  0x86   :  { %v48_v7 = vpop.f32.mrf.mxu0  ;;  %v51_v8 = vpop.f32.mrf.mxu1 }
  0x87   :  { %v49_v9 = vadd.f32 %v67_v6, %v48_v7  ;;  %v52_v10 = vadd.f32 %v67_v6, %v51_v8 }
  0x89   :  { %55 = vst.msk [vmem:[%s118_s3] sm:$0xff] %vm54_vm1, %v49_v9 }
  0x8a   :  { %56 = vst.msk [vmem:[%s118_s3 + $0x8] sm:$0xff] %vm54_vm1, %v52_v10 }

</bundles_post_ra>
